<compile_context>
chip_gen: v6e
topology: v6e:2x2x1
jax: 0.10.0
libtpu: 0.0.40
codegen_flags: <defaults>
</compile_context>

<pallas_src>
import functools

import jax
import jax.numpy as jnp
import numpy as np
from jax import lax
from jax.experimental import pallas as pl
from jax.experimental.pallas import tpu as pltpu


def _round_up(x, m):
    return ((x + m - 1) // m) * m


@functools.lru_cache(maxsize=1)
def _vmem_capacity_bytes():
    """Physical VMEM per TensorCore (generation probe).  Falls back to the most
    restrictive known value (64 MiB, v7x) if the query is unavailable."""
    try:
        info = pltpu.get_tpu_info()
        for name in ("vmem_capacity_bytes", "vmem_bytes", "vmem_size_bytes"):
            cap = getattr(info, name, None)
            if cap:
                return int(cap)
    except Exception:
        pass
    return 64 << 20


def _elastic_arcface_kernel(logits_ref, label_ref, scm_ref, ssm_ref, out_ref,
                            *, s, tile_c):
    """One (tile_b, tile_c) tile: add the angular margin at each row's target
    column and scale by s (s pre-folded into scm/ssm)."""
    j = pl.program_id(1)

    # Upcast BEFORE any arithmetic: 1 - x*x near |x| ~ 1 in bf16 would cancel.
    x = logits_ref[...].astype(jnp.float32)          # (tile_b, tile_c)

    # Target column relative to this class tile, computed on the (tile_b, 1)
    # labels (cheap) instead of the full tile.  Rows with label == -1 (ignored)
    # and rows whose target lies in another class tile give a value outside
    # [0, tile_c), which never matches the non-negative iota below.
    tgt = label_ref[...] - j * tile_c                # (tile_b, 1) int32
    scm = scm_ref[...]                               # (tile_b, 1) f32 = s*cos(m)
    ssm = ssm_ref[...]                               # (tile_b, 1) f32 = s*sin(m)

    col = lax.broadcasted_iota(jnp.int32, x.shape, 1)
    is_target = col == tgt

    # cos(acos(x) + m)*s = x*(s*cos m) - sqrt(1 - x^2)*(s*sin m)   (|x| <= 1).
    # 1 - x^2 is clamped at 0 so cosines that round a hair above 1 (e.g. bf16
    # inputs) don't become NaN — the usual ArcFace clamp; this is the only
    # deliberate divergence from torch.acos's NaN propagation.
    sin_theta = jnp.sqrt(jnp.maximum(1.0 - x * x, 0.0))
    out_ref[...] = jnp.where(is_target, x * scm - sin_theta * ssm,
                             x * s).astype(out_ref.dtype)


def elastic_arcface_pallas(logits, label, margin, *, s=64.0,
                           tile_b=None, tile_c=None, out_dtype=None,
                           alias_logits=False):
    """logits: (B, C) f32/bf16 cosines, label: (B,) int (-1 = ignore),
    margin: (B,) f32 per-row additive angular margin.  Returns (B, C)."""
    B, C = logits.shape
    in_dtype = np.dtype(logits.dtype)
    out_dtype = np.dtype(out_dtype) if out_dtype is not None else in_dtype
    pair_itemsize = in_dtype.itemsize + out_dtype.itemsize

    # ---- generation-aware DMA budget per grid step (in + out bytes) ----
    vmem_cap = _vmem_capacity_bytes()
    is_v7x_class = vmem_cap <= (64 << 20)
    if is_v7x_class:
        step_bytes_budget = 16 << 20     # ~2.5 us of DMA at ~3.2 TB/s/TC
        vmem_limit_cap = 48 << 20        # leave headroom under 64 MiB physical
    else:
        step_bytes_budget = 8 << 20      # 4 MiB/side already ~85% of roofline
        vmem_limit_cap = 100 << 20       # 128 MiB physical on v5e/v6e

    # ---- tile selection: big lane-dense blocks (HBM-bandwidth-bound op) ----
    if tile_b is None:
        tile_b = min(_round_up(B, 8), 256)
    tile_b = min(_round_up(tile_b, 8), _round_up(B, 8))

    auto_c = tile_c is None
    if auto_c:
        budget_cols = step_bytes_budget // (tile_b * pair_itemsize)
        tile_c = max(1024, (budget_cols // 128) * 128)
    tile_c = min(_round_up(tile_c, 128), _round_up(C, 128))

    # v7x has 2 TensorCores: if auto tiling collapsed a large problem to one
    # tile, split the class axis so both cores get work.
    if auto_c and is_v7x_class:
        n_b = -(-B // tile_b)
        n_c = -(-C // tile_c)
        if (n_b == 1 and n_c == 1 and C > 256
                and tile_b * tile_c * pair_itemsize >= (4 << 20)):
            half = _round_up(-(-C // 2), 128)
            if half < tile_c:
                tile_c = half

    grid = (pl.cdiv(B, tile_b), pl.cdiv(C, tile_c))

    # Double-buffered in + out tiles plus slack; 32 MiB floor (v5e's default
    # scoped VMEM of 16 MiB is too small), generation-aware cap above.
    tile_bytes = tile_b * tile_c * pair_itemsize
    vmem_limit = int(min(max(2 * tile_bytes + (8 << 20), 32 << 20),
                         vmem_limit_cap))

    label2 = label.reshape(B, 1).astype(jnp.int32)
    margin = margin.astype(jnp.float32)
    scm = (float(s) * jnp.cos(margin)).reshape(B, 1)   # s*cos(margin)
    ssm = (float(s) * jnp.sin(margin)).reshape(B, 1)   # s*sin(margin)

    # Reuse the logits HBM buffer as the output (matches torch's in-place
    # acos_/cos_/mul_); only valid when the dtypes match exactly.
    aliases = {0: 0} if (alias_logits and in_dtype == out_dtype) else {}

    cost = pl.CostEstimate(
        flops=int(5 * B * C),
        transcendentals=int(B * C),          # one sqrt per element
        bytes_accessed=int(B * C * pair_itemsize + B * 16))

    kernel = functools.partial(_elastic_arcface_kernel, s=float(s), tile_c=tile_c)
    return pl.pallas_call(
        kernel,
        out_shape=jax.ShapeDtypeStruct((B, C), out_dtype),
        grid=grid,
        in_specs=[
            pl.BlockSpec((tile_b, tile_c), lambda i, j: (i, j)),   # logits tile
            pl.BlockSpec((tile_b, 1), lambda i, j: (i, 0)),        # labels
            pl.BlockSpec((tile_b, 1), lambda i, j: (i, 0)),        # s*cos(margin)
            pl.BlockSpec((tile_b, 1), lambda i, j: (i, 0)),        # s*sin(margin)
        ],
        out_specs=pl.BlockSpec((tile_b, tile_c), lambda i, j: (i, j)),
        input_output_aliases=aliases,
        cost_estimate=cost,
        compiler_params=pltpu.CompilerParams(
            dimension_semantics=("parallel", "parallel"),
            vmem_limit_bytes=vmem_limit),
    )(logits, label2, scm, ssm)


def elastic_arcface_forward(logits, label, key, *, s=64.0, m=0.5, std=0.05,
                            plus=False, out_dtype=None):
    """JAX glue: sample the per-row elastic margin, then run the kernel.

    Note: torch.normal samples only for rows with label != -1; here we sample
    for every row and ignore invalid rows inside the kernel (same distribution,
    different RNG stream — RNG streams are not portable anyway).
    """
    B, _ = logits.shape
    if plus:
        # TODO(synk): plus=True sorts margins by the target cosine across rows;
        # this cross-row gather+sort is glue-level JAX work, not implemented.
        raise NotImplementedError("ElasticArcFace plus=True not implemented")
    margin = m + std * jax.random.normal(key, (B,), dtype=jnp.float32)
    return elastic_arcface_pallas(logits, label, margin, s=s, out_dtype=out_dtype)


if __name__ == "__main__":
    key = jax.random.PRNGKey(0)
    k_logits, k_label, k_margin = jax.random.split(key, 3)

    B, C = 8, 384  # small synthetic shapes; C not a multiple of the class tile
    logits = jax.random.uniform(k_logits, (B, C), jnp.float32,
                                minval=-0.999, maxval=0.999)
    label = jax.random.randint(k_label, (B,), 0, C, dtype=jnp.int32)
    label = label.at[3].set(-1)  # one ignored row (label == -1)

    margin = 0.5 + 0.05 * jax.random.normal(k_margin, (B,), dtype=jnp.float32)

    # Literal reference: acos -> scatter-add margin at target -> cos -> * s.
    theta = jnp.arccos(logits)
    m_hot = jax.nn.one_hot(label, C, dtype=jnp.float32) * jnp.where(
        label[:, None] != -1, margin[:, None], 0.0)
    ref = jnp.cos(theta + m_hot) * 64.0

    # 1) explicit small tiles -> exercises multi-tile grid + class tail mask.
    out = elastic_arcface_pallas(logits, label, margin, s=64.0,
                                 tile_b=8, tile_c=256)
    jax.block_until_ready(out)
    np.testing.assert_allclose(np.asarray(out), np.asarray(ref),
                               rtol=1e-3, atol=5e-2)

    # 2) auto (generation-aware) tiles through the forward wrapper.
    out2 = elastic_arcface_forward(logits, label, k_margin)
    jax.block_until_ready(out2)
    np.testing.assert_allclose(np.asarray(out2), np.asarray(ref),
                               rtol=1e-3, atol=5e-2)

    # 3) in-place style path: logits buffer aliased to the output.
    out3 = elastic_arcface_pallas(logits, label, margin, s=64.0,
                                  alias_logits=True)
    jax.block_until_ready(out3)
    np.testing.assert_allclose(np.asarray(out3), np.asarray(ref),
                               rtol=1e-3, atol=5e-2)

    # 4) bf16 logits streamed directly; bf16 output by default (min HBM bytes),
    #    f32 compute inside the kernel.
    logits_bf16 = logits.astype(jnp.bfloat16)
    out_bf16 = elastic_arcface_pallas(logits_bf16, label, margin, s=64.0)
    jax.block_until_ready(out_bf16)
    theta_b = jnp.arccos(logits_bf16.astype(jnp.float32))
    ref_b = jnp.cos(theta_b + m_hot) * 64.0
    np.testing.assert_allclose(np.asarray(out_bf16, dtype=np.float32),
                               np.asarray(ref_b), rtol=3e-2, atol=1.0)

    print("KERNEL_OK")
</pallas_src>

<mosaic_0001>
module attributes {stable_mosaic.version = 11 : i64} {
  func.func @_elastic_arcface_kernel(%arg0: i32, %arg1: i32, %arg2: memref<8x256xf32, #tpu.memory_space<vmem>>, %arg3: memref<8x1xi32, #tpu.memory_space<vmem>>, %arg4: memref<8x1xf32, #tpu.memory_space<vmem>>, %arg5: memref<8x1xf32, #tpu.memory_space<vmem>>, %arg6: memref<8x256xf32, #tpu.memory_space<vmem>>) attributes {dimension_semantics = [#tpu.dimension_semantics<parallel>, #tpu.dimension_semantics<parallel>], iteration_bounds = array<i64: 1, 2>, scalar_prefetch = 0 : i64, scratch_operands = 0 : i64, tpu.core_type = #tpu.core_type<tc>, window_params = [{transform_indices = @transform_0, window_bounds = array<i64: 8, 256>}, {transform_indices = @transform_1, window_bounds = array<i64: 8, 1>}, {transform_indices = @transform_2, window_bounds = array<i64: 8, 1>}, {transform_indices = @transform_3, window_bounds = array<i64: 8, 1>}, {transform_indices = @transform_4, window_bounds = array<i64: 8, 256>}]} {
    %c0 = arith.constant 0 : index
    %c0_0 = arith.constant 0 : index
    %0 = vector.load %arg2[%c0, %c0_0] : memref<8x256xf32, #tpu.memory_space<vmem>>, vector<8x256xf32>
    %c0_1 = arith.constant 0 : index
    %c0_2 = arith.constant 0 : index
    %1 = vector.load %arg3[%c0_1, %c0_2] : memref<8x1xi32, #tpu.memory_space<vmem>>, vector<8x1xi32>
    %c256_i32 = arith.constant 256 : i32
    %2 = arith.muli %arg1, %c256_i32 : i32
    %3 = vector.broadcast %2 : i32 to vector<8x1xi32>
    %4 = arith.subi %1, %3 : vector<8x1xi32>
    %c0_3 = arith.constant 0 : index
    %c0_4 = arith.constant 0 : index
    %5 = vector.load %arg4[%c0_3, %c0_4] : memref<8x1xf32, #tpu.memory_space<vmem>>, vector<8x1xf32>
    %c0_5 = arith.constant 0 : index
    %c0_6 = arith.constant 0 : index
    %6 = vector.load %arg5[%c0_5, %c0_6] : memref<8x1xf32, #tpu.memory_space<vmem>>, vector<8x1xf32>
    %7 = tpu.iota {dimensions = array<i32: 1>} : vector<8x256xi32>
    %8 = vector.broadcast %4 : vector<8x1xi32> to vector<8x256xi32>
    %9 = arith.cmpi eq, %7, %8 : vector<8x256xi32>
    %10 = arith.mulf %0, %0 : vector<8x256xf32>
    %cst = arith.constant 1.000000e+00 : f32
    %11 = vector.broadcast %cst : f32 to vector<8x256xf32>
    %12 = arith.subf %11, %10 : vector<8x256xf32>
    %cst_7 = arith.constant 0.000000e+00 : f32
    %13 = vector.broadcast %cst_7 : f32 to vector<8x256xf32>
    %14 = arith.maximumf %12, %13 : vector<8x256xf32>
    %15 = math.sqrt %14 : vector<8x256xf32>
    %16 = vector.broadcast %5 : vector<8x1xf32> to vector<8x256xf32>
    %17 = arith.mulf %0, %16 : vector<8x256xf32>
    %18 = vector.broadcast %6 : vector<8x1xf32> to vector<8x256xf32>
    %19 = arith.mulf %15, %18 : vector<8x256xf32>
    %20 = arith.subf %17, %19 : vector<8x256xf32>
    %cst_8 = arith.constant 6.400000e+01 : f32
    %21 = vector.broadcast %cst_8 : f32 to vector<8x256xf32>
    %22 = arith.mulf %0, %21 : vector<8x256xf32>
    %23 = arith.select %9, %20, %22 : vector<8x256xi1>, vector<8x256xf32>
    %c0_9 = arith.constant 0 : index
    %c0_10 = arith.constant 0 : index
    %24 = vector.load %arg6[%c0_9, %c0_10] : memref<8x256xf32, #tpu.memory_space<vmem>>, vector<8x256xf32>
    tpu.vector_store %arg6[%c0_9, %c0_10], %23 {strides = array<i32>} : memref<8x256xf32, #tpu.memory_space<vmem>>, vector<8x256xf32>,
    return
  }
  func.func @transform_0(%arg0: i32, %arg1: i32) -> (i32, i32) {
    %c0_i32 = arith.constant 0 : i32
    return %arg0, %arg1 : i32, i32
  }
  func.func @transform_1(%arg0: i32, %arg1: i32) -> (i32, i32) {
    %c0_i32 = arith.constant 0 : i32
    %c0_i32_0 = arith.constant 0 : i32
    return %arg0, %c0_i32 : i32, i32
  }
  func.func @transform_2(%arg0: i32, %arg1: i32) -> (i32, i32) {
    %c0_i32 = arith.constant 0 : i32
    %c0_i32_0 = arith.constant 0 : i32
    return %arg0, %c0_i32 : i32, i32
  }
  func.func @transform_3(%arg0: i32, %arg1: i32) -> (i32, i32) {
    %c0_i32 = arith.constant 0 : i32
    %c0_i32_0 = arith.constant 0 : i32
    return %arg0, %c0_i32 : i32, i32
  }
  func.func @transform_4(%arg0: i32, %arg1: i32) -> (i32, i32) {
    %c0_i32 = arith.constant 0 : i32
    return %arg0, %arg1 : i32, i32
  }
}

</mosaic_0001>

<bundles_post_ra>
// kernel: tpu_custom_call.1
= control target key start
LH: loop header
LB: loop body
LE: loop exit
PB: predicated region body
PF: predicated region fallthrough
CT: control target
= control target key end

     0   :  { %9 = vsyncpa [#allocation3], 0  ;;  %s825_s0 = inlined_call_operand.vmem [shape: f32[8,384], index: 0, kind: input, shape index: {}]   ;;  %s826_s1 = inlined_call_operand.vmem [shape: s32[8,1], index: 1, kind: input, shape index: {}]   ;;  %s827_s2 = inlined_call_operand.vmem [shape: f32[8,1], index: 2, kind: input, shape index: {}]   ;;  %s828_s3 = inlined_call_operand.vmem [shape: f32[8,1], index: 3, kind: input, shape index: {}]   ;;  %s829_s4 = inlined_call_operand.hbm [shape: f32[8,384], index: 4, kind: output, shape index: {}]  }
   0x1   :  { %11 = vsyncpa [#allocation3 + $0x1], 0  ;;  %s692_s15 = smov 0   ;;  %s694_s16 = smov 0  }
   0x2   :  { %s696_s17 = smov 0   ;;  %s698_s18 = smov 0  }
   0x3   :  { %s700_s19 = smov 0   ;;  %s702_s20 = smov 0  }
   0x4 LB: > { %s504_s21 = sadd.s32 4294967295, %s663_s20   ;;  %s505_s22 = sadd.s32 4294967294, %s663_s20   ;;  %s663_s20 = sphi %s702_s20, %s17_s20   ;;  %s659_s19 = sphi %s700_s19, %s836_s19   ;;  %s655_s18 = sphi %s698_s18, %s835_s18   ;;  %s651_s17 = sphi %s696_s17, %s834_s17   ;;  %s647_s16 = sphi %s694_s16, %s833_s16   ;;  %s643_s15 = sphi %s692_s15, %s832_s15  }
   0x5   : > { %s26_s23 = sadd.s32 1, %s659_s19  ;;  %s144_s24 = sadd.s32 1, %s651_s17 }
   0x6   : > { %p27_p0 = scmp.ge.s32.totalorder %s26_s23, 2  ;;  %p154_p1 = scmp.ne.s32.totalorder %s651_s17, %s647_s16 }
   0x7   : > { %p155_p2 = scmp.eq.s32.totalorder %s504_s21, 1  ;;  %p160_p3 = scmp.ne.s32.totalorder %s647_s16, %s643_s15 }
   0x8   : > { %s838_s23 = smov (%p27_p0, %s26_s23), 0  ;;  %p161_p5 = scmp.eq.s32.totalorder %s505_s22, 1 }
   0x9   : > { %p732_p4 = por %p155_p2, %p154_p1  ;;  %s140_s26 = ssub.s32 %s659_s19, %s838_s23 }
   0xa   : > { %p511_p6 = scmp.ge.s32.totalorder %s663_s20, 1  ;;  %p142_p7 = scmp.eq.s32.totalorder %s140_s26, 0 }
   0xb   : > { %p739_p8 = por %p161_p5, %p160_p3  ;;  %p221_p9 = scmp.lt.s32.totalorder %s663_s20, 3 }
   0xc   : > { %s745_s28 = scalar_select %p142_p7, %s651_s17, %s144_s24  }
   0xd   : > { %p222_p10 = pnand %p511_p6, %p221_p9 }
   0xe   : > { %s515_s7 = sshll.u32 (!%p222_p10), %s655_s18, 8  ;;  %s264_s10 = sand.u32 (!%p222_p10), 1, %s647_s16  }
   0xf   : > { %225 = sbr.rel (%p222_p10) target bundleno = 182 (0xb6), region = 36  ;;  %s761_s11 = sshll.u32 (!%p222_p10), %s655_s18, 1 }
  0x10   : > { %p274_p11 = scmp.lt.s32.totalorder (!%p222_p10), %s761_s11, 2  ;;  %s512_s24 = sshll.u32 (!%p222_p10), %s264_s10, 4 }
  0x11   : > { %s266_s26 = scalar_lea.vmem (!%p222_p10), [#allocation2], %s512_s24  ;;  %s772_s29 = scalar_lea.sflag (!%p222_p10), [#allocation3], %s264_s10 }
  0x14   : > { %v308_v0 = vld [vmem:[%s827_s2] sm:$0xff]  ;;  %v665_v2 = vmov 0   ;;  %v306_v3 = vstv %s515_s7  ;;  %s275_s12 = scalar_select %p274_p11, %s761_s11, 2  ;;  %v310_v16 = vlaneseq }
  0x15   : > { %v304_v1 = vld [vmem:[%s826_s1] sm:$0xff]  ;;  %581 = vset.pattern.permute.xlu0 %v665_v2  ;;  %582 = vset.pattern.permute.xlu1 %v665_v2  ;;  %s369_s30 = ssub.s32 (%p732_p4), 3, %s761_s11 }
  0x16   : > { %340 = vperm.xlu0 %581, %v308_v0   ;;  %v307_v4 = vsub.s32 %v304_v1, %v306_v3  ;;  %v309_v5 = vld [vmem:[%s828_s3] sm:$0xff]  ;;  %s514_s13 = sshll.u32 %s275_s12, 3  ;;  %v311_v21 = vand.u32 127, %v310_v16  ;;  %p370_p12 = scmp.lt.s32.totalorder (%p732_p4), %s369_s30, 2 }
  0x17   : > { %s279_s22 = scalar_lea.vmem %s825_s0, %s514_s13 }
  0x18   : > { %314 = vperm.xlu1 %582, %v307_v4   ;;  %v302_v6 = vld [vmem:[%s279_s22] sm:$0xff]  ;;  %v303_v7 = vld [vmem:[%s279_s22 + $0x8] sm:$0xff]  ;;  %v312_v27 = vadd.s32 128, %v311_v21 }
  0x19   : > { %v318_v8 = vmul.f32 %v302_v6, %v302_v6  ;;  %v319_v9 = vmul.f32 %v303_v7, %v303_v7  ;;  %v354_v29 = vmul.f32 64.0, %v302_v6  ;;  %v355_v30 = vmul.f32 64.0, %v303_v7 }
  0x1a   : > { %347 = vperm.xlu0 %581, %v309_v5  }
  0x1b   : > { %v320_v10 = vsub.f32 1.0, %v318_v8  ;;  %v321_v11 = vsub.f32 1.0, %v319_v9 }
  0x1d   : > { %v322_v12 = vmax.f32 %v320_v10, 0.0  ;;  %v323_v13 = vmax.f32 %v321_v11, 0.0 }
  0x1f   : > { %583 = vrsqrt.f32 %v322_v12  ;;  %vm326_vm0 = vcmp.eq.f32.partialorder %v322_v12, inf  ;;  %vm333_vm1 = vcmp.eq.f32.partialorder %v323_v13, inf  ;;  %v329_v19 = vand.u32 2147483648, %v322_v12 }
  0x20   : > { %585 = vrsqrt.f32 %v323_v13  ;;  %v336_v20 = vand.u32 2147483648, %v323_v13  ;;  %vm328_vm2 = vcmp.eq.f32.partialorder %v322_v12, 0.0  ;;  %vm335_vm3 = vcmp.eq.f32.partialorder %v323_v13, 0.0 }
  0x2c   : > { %v584_v14 = vpop.eup %583 }
  0x2d   : > { %v586_v15 = vpop.eup %585  ;;  %v325_v17 = vmul.f32 %v584_v14, %v322_v12 }
  0x2e   : > { %v332_v18 = vmul.f32 %v586_v15, %v323_v13 }
  0x2f   : > { %v327_v22 = vsel %vm326_vm0, %v322_v12, %v325_v17 }
  0x30   : > { %v334_v23 = vsel %vm333_vm1, %v323_v13, %v332_v18  ;;  %v330_v25 = vsel %vm328_vm2, %v329_v19, %v327_v22 }
  0x31   : > { %v337_v26 = vsel %vm335_vm3, %v336_v20, %v334_v23 }
  0x91   : > { %v341_v24 = vpop.permute.xlu0 %340 }
  0x92   : > { %v343_v32 = vmul.f32 %v341_v24, %v302_v6  ;;  %v344_v33 = vmul.f32 %v341_v24, %v303_v7 }
  0x93   : > { %v315_v28 = vpop.permute.xlu1 %314 }
  0x94   : > { %vm316_vm4 = vcmp.eq.s32.totalorder %v311_v21, %v315_v28  ;;  %vm317_vm5 = vcmp.eq.s32.totalorder %v312_v27, %v315_v28 }
  0x95   : > { %v348_v31 = vpop.permute.xlu0 %347 }
  0x96   : > { %v350_v34 = vmul.f32 %v348_v31, %v330_v25  ;;  %v351_v35 = vmul.f32 %v348_v31, %v337_v26 }
  0x97   : > { %367 = sbr.rel (!%p732_p4) target bundleno = 182 (0xb6), region = 40 }
  0x98   : > { %v352_v36 = vsub.f32 %v343_v32, %v350_v34  ;;  %v353_v37 = vsub.f32 %v344_v33, %v351_v35 }
  0x9a   : > { %v356_v38 = vsel %vm316_vm4, %v352_v36, %v354_v29  ;;  %v357_v39 = vsel %vm317_vm5, %v353_v37, %v355_v30 }
  0x9b   : > { %358 = vst [vmem:[%s266_s26] sm:$0xff] %v356_v38  ;;  %359 = vst [vmem:[%s266_s26 + $0x8] sm:$0xff] %v357_v39 }
  0x9c   : > { %s840_s30 = smov (!%p370_p12, %s369_s30), 2 }
  0x9d   : > { %s777_s5 = sshll.u32 %s840_s30, 7 }
  0x9e   : > { %s374_s6 = ssub.s32 256, %s777_s5 }
  0x9f   : > { %375 = vsyncadd %s772_s29, %s374_s6  ;;  %p519_p13 = scmp.ne.s32.totalorder %s777_s5, 0  ;;  %s380_s25 = scalar_lea.hbm %s829_s4, %s515_s7 }
  0xa0   : > { %s383_s10 = sshll.u32 %s266_s26, 4  ;;  %s666_s12 = smov [#allocation2]   ;;  %s384_s10 = int_to_ptr.vmem [resolvable:$true] %s383_s10 }
  0xa1   : > { %s587_s11 = scalar_lea.vmem %s384_s10, %s777_s5  ;;  %s591_s13 = sshll.u32 %s666_s12, 4  ;;  %s592_s13 = int_to_ptr.vmem [resolvable:$false] %s591_s13 }
  0xa2   : > { %p588_p0 = scmp.ne.s32.totalorder %s384_s10, %s587_s11  ;;  %s593_s14 = scalar_lea.vmem %s592_s13, 512 }
  0xa3   : > { %p594_p3 = scmp.lt.s32.totalorder %s384_s10, %s592_s13  ;;  %p595_p4 = scmp.lt.s32.totalorder %s593_s14, %s587_s11 }
  0xa4   : > { %p589_p1 = pnand %p588_p0, %p519_p13 }
  0xa5   : > { %p596_p5 = por %p595_p4, %p594_p3 }
  0xa6   : > { %p590_p2 = pneg %p589_p1 }
  0xa8   : > { %p597_p6 = pnand %p596_p5, %p590_p2 }
  0xaa   : > { %600 = shalt.err (!%p597_p6)
}
  0xab   : > { %s601_s18 = scalar_lea.hbm %s380_s25, %s777_s5  ;;  %s605_s22 = scalar_lea.hbm %s829_s4, 384 }
  0xac   : > { %p602_p7 = scmp.ne.s32.totalorder %s380_s25, %s601_s18  ;;  %p606_p11 = scmp.lt.s32.totalorder %s380_s25, %s829_s4 }
  0xad   : > { %p607_p12 = scmp.lt.s32.totalorder %s605_s22, %s601_s18 }
  0xae   : > { %p603_p9 = pnand %p602_p7, %p519_p13 }
  0xaf   : > { %p608_p0 = por %p607_p12, %p606_p11 }
  0xb0   : > { %p604_p10 = pneg %p603_p9 }
  0xb2   : > { %p609_p1 = pnand %p608_p0, %p604_p10 }
  0xb4   : > { %612 = shalt.err (!%p609_p1)
}
  0xb5   : > { %386 = dma.vmem_to_hbm [thread:$0]  (%p519_p13), %s384_s10, %s777_s5, %s380_s25, %s772_s29  }
  0xb6 PF: > { %p531_p2 = scmp.ge.s32.totalorder %s663_s20, 2  ;;  %s395_s30 = sand.u32 1, %s643_s15  }
  0xb7   : > { %s396_s6 = scalar_lea.sflag [#allocation3], %s395_s30 }
  0xb8   : > { %p528_p3 = pnand %p531_p2, %p739_p8 }
  0xba   : > { %p529_p4 = pneg %p528_p3 }
  0xbc   : > { %638 = dma.done.wait (%p529_p4), %s396_s6, 256  }
  0xbd   : > { %640 = vsyncadd (%p529_p4), %s396_s6, 4294967040  ;;  %s17_s20 = sadd.s32 1, %s663_s20   ;;  %s832_s15 = smov %s647_s16 }
  0xbe   : > { %p14_p5 = scmp.ge.s32.totalorder %s17_s20, 4   ;;  %s833_s16 = smov %s651_s17 }
  0xbf   : > { %s834_s17 = smov %s745_s28  ;;  %s835_s18 = smov %s659_s19 }
  0xc0   : > { %s836_s19 = smov %s838_s23  ;;  %16 = sbr.rel (!%p14_p5) target bundleno = 4 (0x4), region = 80 }
  0xc5   :  { %401 = vsyncpa [#allocation3], 1 }
  0xc6   :  { %403 = vsyncpa [#allocation3 + $0x1], 1 }

</bundles_post_ra>
